<compile_context>
chip_gen: v7x
topology: tpu7x:2x2x1
jax: 0.10.0
libtpu: 0.0.40
codegen_flags: <defaults>
</compile_context>

<pallas_src>
import jax
import jax.numpy as jnp
from jax.experimental import pallas as pl
from jax.experimental.pallas import tpu as pltpu

JOINTS_MAPPING = [5, 6, 7, 9, 10, 11, 17, 18, 19, 13, 14, 15, 1, 2, 3]

_LANE_TILE_CAP = 2048   # lanes per grid step (multiple of 128); ~0.5-1 MiB buffers
_N_IN = 13              # delta(3) + R(9) + up-mask(1)
_N_OUT = 9              # b(3) + u(3) + l(3)


def _round_up(x, m):
    return ((x + m - 1) // m) * m


def _axis_kernel(x_ref, o_ref):
    # x_ref: [13*8, tn] f32, o_ref: [9*8, tn] f32.
    # Every component is a full 8-sublane [8, tn] block (whole vregs).
    def comp(k):
        return x_ref[8 * k:8 * (k + 1), :]

    d0, d1, d2 = comp(0), comp(1), comp(2)

    # b = R^T @ delta : b_d = sum_k R[k, d] * delta_k ; R[k, d] at component 3+3k+d.
    b0 = comp(3) * d0 + comp(6) * d1 + comp(9) * d2
    b1 = comp(4) * d0 + comp(7) * d1 + comp(10) * d2
    b2 = comp(5) * d0 + comp(8) * d1 + comp(11) * d2

    # up = (m, 1, m) with m in {0, 1}:  l = b x up
    m = comp(12)
    l0 = b1 * m - b2
    l1 = (b2 - b0) * m
    l2 = b0 - b1 * m

    # u = l x b
    u0 = l1 * b2 - l2 * b1
    u1 = l2 * b0 - l0 * b2
    u2 = l0 * b1 - l1 * b0

    # rsqrt (EUP) + multiplies instead of sqrt + divides (no epsilon, matching ref).
    inv_b = jax.lax.rsqrt(b0 * b0 + b1 * b1 + b2 * b2)
    inv_u = jax.lax.rsqrt(u0 * u0 + u1 * u1 + u2 * u2)
    inv_l = jax.lax.rsqrt(l0 * l0 + l1 * l1 + l2 * l2)

    def store(k, v):
        o_ref[8 * k:8 * (k + 1), :] = v   # sublane-aligned direct group store

    store(0, b0 * inv_b)
    store(1, b1 * inv_b)
    store(2, b2 * inv_b)
    store(3, u0 * inv_u)
    store(4, u1 * inv_u)
    store(5, u2 * inv_u)
    store(6, l0 * inv_l)
    store(7, l1 * inv_l)
    store(8, l2 * inv_l)


@jax.jit
def axis_layer_forward(hand_joints, transf):
    """hand_joints: [B, 21, 3] f32, transf: [B, 16, 4, 4] f32
    returns (b_axis, u_axis, l_axis), each [B, 15, 3] f32."""
    hand_joints = hand_joints.astype(jnp.float32)
    transf = transf.astype(jnp.float32)
    B = transf.shape[0]
    N = B * 15

    mapping = jnp.asarray(JOINTS_MAPPING, dtype=jnp.int32)

    # ---- component-major [13, N] slab (one fused input DMA) ----
    hj_cm = jnp.transpose(hand_joints, (2, 0, 1))                   # [3, B, 21]
    delta_cm = hj_cm[:, :, mapping] - hj_cm[:, :, mapping + 1]      # [3, B, 15]

    R = transf[:, 1:, :3, :3]                                       # [B, 15, 3, 3]
    r_cm = jnp.transpose(R, (2, 3, 0, 1)).reshape(9, B, 15)         # comp 3+3k+d = R[:, :, k, d]

    mask_j = jnp.concatenate([jnp.zeros((12,), jnp.float32),
                              jnp.ones((3,), jnp.float32)])         # up = (m, 1, m)
    mask_cm = jnp.broadcast_to(mask_j[None, None, :], (1, B, 15))

    slab = jnp.concatenate([delta_cm, r_cm, mask_cm], axis=0).reshape(_N_IN, N)

    # ---- lane tiling: full-sublane repack -> [13*8, L_total] ----
    L_needed = pl.cdiv(N, 8)
    if L_needed <= 128:
        tn = 128
    else:
        # >= 2 grid steps when there is enough work (both TensorCores on v7x).
        tn = min(_round_up(pl.cdiv(L_needed, 2), 128), _LANE_TILE_CAP)
    L_total = _round_up(L_needed, tn)
    n_pad = 8 * L_total
    grid = L_total // tn

    if n_pad > N:
        # Benign pad pattern: delta=(1,0,0), R=identity, mask=0 -> finite outputs
        # everywhere (no Inf/NaN in the padded, sliced-away lanes).
        pad_col = jnp.array([1., 0., 0.,
                             1., 0., 0.,
                             0., 1., 0.,
                             0., 0., 1.,
                             0.], dtype=jnp.float32)
        pad_block = jnp.broadcast_to(pad_col[:, None], (_N_IN, n_pad - N))
        slab = jnp.concatenate([slab, pad_block], axis=1)
    slab = slab.reshape(_N_IN * 8, L_total)

    out = pl.pallas_call(
        _axis_kernel,
        out_shape=jax.ShapeDtypeStruct((_N_OUT * 8, L_total), jnp.float32),
        grid=(grid,),
        in_specs=[pl.BlockSpec((_N_IN * 8, tn), lambda i: (0, i))],
        out_specs=pl.BlockSpec((_N_OUT * 8, tn), lambda i: (0, i)),
        compiler_params=pltpu.CompilerParams(dimension_semantics=("parallel",)),
    )(slab)

    # ---- single-transpose epilogue ----
    out = out.reshape(_N_OUT, n_pad)[:, :N].reshape(_N_OUT, B, 15)
    out = jnp.transpose(out, (1, 2, 0))                              # [B, 15, 9]
    b_axis = out[..., 0:3]
    u_axis = out[..., 3:6]
    l_axis = out[..., 6:9]
    return b_axis, u_axis, l_axis


def _reference_forward(hand_joints, transf):
    """Pure-JAX reference mirroring the PyTorch module."""
    B = transf.shape[0]
    mapping = jnp.asarray(JOINTS_MAPPING, dtype=jnp.int32)
    b = hand_joints[:, mapping, :] - hand_joints[:, mapping + 1, :]
    R = transf[:, 1:, :3, :3]
    b = jnp.einsum("bjkd,bjk->bjd", R, b)  # R^T @ delta
    up_base = jnp.concatenate(
        [jnp.tile(jnp.array([[0.0, 1.0, 0.0]], jnp.float32), (12, 1)),
         jnp.tile(jnp.array([[1.0, 1.0, 1.0]], jnp.float32), (3, 1))], axis=0)
    up = jnp.broadcast_to(up_base[None], (B, 15, 3))
    l = jnp.cross(b, up)
    u = jnp.cross(l, b)
    nrm = lambda v: v / jnp.linalg.norm(v, axis=2, keepdims=True)
    return nrm(b), nrm(u), nrm(l)


if __name__ == "__main__":
    key = jax.random.PRNGKey(0)
    k1, k2 = jax.random.split(key)
    B = 2
    hand_joints = jax.random.normal(k1, (B, 21, 3), dtype=jnp.float32)
    transf = jax.random.normal(k2, (B, 16, 4, 4), dtype=jnp.float32)

    b_axis, u_axis, l_axis = axis_layer_forward(hand_joints, transf)
    jax.block_until_ready((b_axis, u_axis, l_axis))

    b_ref, u_ref, l_ref = _reference_forward(hand_joints, transf)
    assert b_axis.shape == (B, 15, 3)
    assert u_axis.shape == (B, 15, 3)
    assert l_axis.shape == (B, 15, 3)
    assert jnp.allclose(b_axis, b_ref, atol=1e-5, rtol=1e-5)
    assert jnp.allclose(u_axis, u_ref, atol=1e-5, rtol=1e-5)
    assert jnp.allclose(l_axis, l_ref, atol=1e-5, rtol=1e-5)

    print("KERNEL_OK")
</pallas_src>

<mosaic_0001>
module attributes {stable_mosaic.version = 11 : i64} {
  func.func @_axis_kernel(%arg0: i32, %arg1: memref<104x128xf32, #tpu.memory_space<vmem>>, %arg2: memref<72x128xf32, #tpu.memory_space<vmem>>) attributes {dimension_semantics = [#tpu.dimension_semantics<parallel>], iteration_bounds = array<i64: 1>, scalar_prefetch = 0 : i64, scratch_operands = 0 : i64, tpu.core_type = #tpu.core_type<tc>, window_params = [{transform_indices = @transform_0, window_bounds = array<i64: 104, 128>}, {transform_indices = @transform_1, window_bounds = array<i64: 72, 128>}]} {
    %c0 = arith.constant 0 : index
    %c0_0 = arith.constant 0 : index
    %0 = vector.load %arg1[%c0, %c0_0] : memref<104x128xf32, #tpu.memory_space<vmem>>, vector<8x128xf32>
    %c8 = arith.constant 8 : index
    %c0_1 = arith.constant 0 : index
    %1 = vector.load %arg1[%c8, %c0_1] : memref<104x128xf32, #tpu.memory_space<vmem>>, vector<8x128xf32>
    %c16 = arith.constant 16 : index
    %c0_2 = arith.constant 0 : index
    %2 = vector.load %arg1[%c16, %c0_2] : memref<104x128xf32, #tpu.memory_space<vmem>>, vector<8x128xf32>
    %c24 = arith.constant 24 : index
    %c0_3 = arith.constant 0 : index
    %3 = vector.load %arg1[%c24, %c0_3] : memref<104x128xf32, #tpu.memory_space<vmem>>, vector<8x128xf32>
    %4 = arith.mulf %3, %0 : vector<8x128xf32>
    %c48 = arith.constant 48 : index
    %c0_4 = arith.constant 0 : index
    %5 = vector.load %arg1[%c48, %c0_4] : memref<104x128xf32, #tpu.memory_space<vmem>>, vector<8x128xf32>
    %6 = arith.mulf %5, %1 : vector<8x128xf32>
    %7 = arith.addf %4, %6 : vector<8x128xf32>
    %c72 = arith.constant 72 : index
    %c0_5 = arith.constant 0 : index
    %8 = vector.load %arg1[%c72, %c0_5] : memref<104x128xf32, #tpu.memory_space<vmem>>, vector<8x128xf32>
    %9 = arith.mulf %8, %2 : vector<8x128xf32>
    %10 = arith.addf %7, %9 : vector<8x128xf32>
    %c32 = arith.constant 32 : index
    %c0_6 = arith.constant 0 : index
    %11 = vector.load %arg1[%c32, %c0_6] : memref<104x128xf32, #tpu.memory_space<vmem>>, vector<8x128xf32>
    %12 = arith.mulf %11, %0 : vector<8x128xf32>
    %c56 = arith.constant 56 : index
    %c0_7 = arith.constant 0 : index
    %13 = vector.load %arg1[%c56, %c0_7] : memref<104x128xf32, #tpu.memory_space<vmem>>, vector<8x128xf32>
    %14 = arith.mulf %13, %1 : vector<8x128xf32>
    %15 = arith.addf %12, %14 : vector<8x128xf32>
    %c80 = arith.constant 80 : index
    %c0_8 = arith.constant 0 : index
    %16 = vector.load %arg1[%c80, %c0_8] : memref<104x128xf32, #tpu.memory_space<vmem>>, vector<8x128xf32>
    %17 = arith.mulf %16, %2 : vector<8x128xf32>
    %18 = arith.addf %15, %17 : vector<8x128xf32>
    %c40 = arith.constant 40 : index
    %c0_9 = arith.constant 0 : index
    %19 = vector.load %arg1[%c40, %c0_9] : memref<104x128xf32, #tpu.memory_space<vmem>>, vector<8x128xf32>
    %20 = arith.mulf %19, %0 : vector<8x128xf32>
    %c64 = arith.constant 64 : index
    %c0_10 = arith.constant 0 : index
    %21 = vector.load %arg1[%c64, %c0_10] : memref<104x128xf32, #tpu.memory_space<vmem>>, vector<8x128xf32>
    %22 = arith.mulf %21, %1 : vector<8x128xf32>
    %23 = arith.addf %20, %22 : vector<8x128xf32>
    %c88 = arith.constant 88 : index
    %c0_11 = arith.constant 0 : index
    %24 = vector.load %arg1[%c88, %c0_11] : memref<104x128xf32, #tpu.memory_space<vmem>>, vector<8x128xf32>
    %25 = arith.mulf %24, %2 : vector<8x128xf32>
    %26 = arith.addf %23, %25 : vector<8x128xf32>
    %c96 = arith.constant 96 : index
    %c0_12 = arith.constant 0 : index
    %27 = vector.load %arg1[%c96, %c0_12] : memref<104x128xf32, #tpu.memory_space<vmem>>, vector<8x128xf32>
    %28 = arith.mulf %18, %27 : vector<8x128xf32>
    %29 = arith.subf %28, %26 : vector<8x128xf32>
    %30 = arith.subf %26, %10 : vector<8x128xf32>
    %31 = arith.mulf %30, %27 : vector<8x128xf32>
    %32 = arith.mulf %18, %27 : vector<8x128xf32>
    %33 = arith.subf %10, %32 : vector<8x128xf32>
    %34 = arith.mulf %31, %26 : vector<8x128xf32>
    %35 = arith.mulf %33, %18 : vector<8x128xf32>
    %36 = arith.subf %34, %35 : vector<8x128xf32>
    %37 = arith.mulf %33, %10 : vector<8x128xf32>
    %38 = arith.mulf %29, %26 : vector<8x128xf32>
    %39 = arith.subf %37, %38 : vector<8x128xf32>
    %40 = arith.mulf %29, %18 : vector<8x128xf32>
    %41 = arith.mulf %31, %10 : vector<8x128xf32>
    %42 = arith.subf %40, %41 : vector<8x128xf32>
    %43 = arith.mulf %10, %10 : vector<8x128xf32>
    %44 = arith.mulf %18, %18 : vector<8x128xf32>
    %45 = arith.addf %43, %44 : vector<8x128xf32>
    %46 = arith.mulf %26, %26 : vector<8x128xf32>
    %47 = arith.addf %45, %46 : vector<8x128xf32>
    %48 = math.rsqrt %47 : vector<8x128xf32>
    %49 = arith.mulf %36, %36 : vector<8x128xf32>
    %50 = arith.mulf %39, %39 : vector<8x128xf32>
    %51 = arith.addf %49, %50 : vector<8x128xf32>
    %52 = arith.mulf %42, %42 : vector<8x128xf32>
    %53 = arith.addf %51, %52 : vector<8x128xf32>
    %54 = math.rsqrt %53 : vector<8x128xf32>
    %55 = arith.mulf %29, %29 : vector<8x128xf32>
    %56 = arith.mulf %31, %31 : vector<8x128xf32>
    %57 = arith.addf %55, %56 : vector<8x128xf32>
    %58 = arith.mulf %33, %33 : vector<8x128xf32>
    %59 = arith.addf %57, %58 : vector<8x128xf32>
    %60 = math.rsqrt %59 : vector<8x128xf32>
    %61 = arith.mulf %10, %48 : vector<8x128xf32>
    %c0_13 = arith.constant 0 : index
    %c0_14 = arith.constant 0 : index
    %62 = vector.load %arg2[%c0_13, %c0_14] : memref<72x128xf32, #tpu.memory_space<vmem>>, vector<8x128xf32>
    tpu.vector_store %arg2[%c0_13, %c0_14], %61 {strides = array<i32>} : memref<72x128xf32, #tpu.memory_space<vmem>>, vector<8x128xf32>,
    %63 = arith.mulf %18, %48 : vector<8x128xf32>
    %c8_15 = arith.constant 8 : index
    %c0_16 = arith.constant 0 : index
    %64 = vector.load %arg2[%c8_15, %c0_16] : memref<72x128xf32, #tpu.memory_space<vmem>>, vector<8x128xf32>
    tpu.vector_store %arg2[%c8_15, %c0_16], %63 {strides = array<i32>} : memref<72x128xf32, #tpu.memory_space<vmem>>, vector<8x128xf32>,
    %65 = arith.mulf %26, %48 : vector<8x128xf32>
    %c16_17 = arith.constant 16 : index
    %c0_18 = arith.constant 0 : index
    %66 = vector.load %arg2[%c16_17, %c0_18] : memref<72x128xf32, #tpu.memory_space<vmem>>, vector<8x128xf32>
    tpu.vector_store %arg2[%c16_17, %c0_18], %65 {strides = array<i32>} : memref<72x128xf32, #tpu.memory_space<vmem>>, vector<8x128xf32>,
    %67 = arith.mulf %36, %54 : vector<8x128xf32>
    %c24_19 = arith.constant 24 : index
    %c0_20 = arith.constant 0 : index
    %68 = vector.load %arg2[%c24_19, %c0_20] : memref<72x128xf32, #tpu.memory_space<vmem>>, vector<8x128xf32>
    tpu.vector_store %arg2[%c24_19, %c0_20], %67 {strides = array<i32>} : memref<72x128xf32, #tpu.memory_space<vmem>>, vector<8x128xf32>,
    %69 = arith.mulf %39, %54 : vector<8x128xf32>
    %c32_21 = arith.constant 32 : index
    %c0_22 = arith.constant 0 : index
    %70 = vector.load %arg2[%c32_21, %c0_22] : memref<72x128xf32, #tpu.memory_space<vmem>>, vector<8x128xf32>
    tpu.vector_store %arg2[%c32_21, %c0_22], %69 {strides = array<i32>} : memref<72x128xf32, #tpu.memory_space<vmem>>, vector<8x128xf32>,
    %71 = arith.mulf %42, %54 : vector<8x128xf32>
    %c40_23 = arith.constant 40 : index
    %c0_24 = arith.constant 0 : index
    %72 = vector.load %arg2[%c40_23, %c0_24] : memref<72x128xf32, #tpu.memory_space<vmem>>, vector<8x128xf32>
    tpu.vector_store %arg2[%c40_23, %c0_24], %71 {strides = array<i32>} : memref<72x128xf32, #tpu.memory_space<vmem>>, vector<8x128xf32>,
    %73 = arith.mulf %29, %60 : vector<8x128xf32>
    %c48_25 = arith.constant 48 : index
    %c0_26 = arith.constant 0 : index
    %74 = vector.load %arg2[%c48_25, %c0_26] : memref<72x128xf32, #tpu.memory_space<vmem>>, vector<8x128xf32>
    tpu.vector_store %arg2[%c48_25, %c0_26], %73 {strides = array<i32>} : memref<72x128xf32, #tpu.memory_space<vmem>>, vector<8x128xf32>,
    %75 = arith.mulf %31, %60 : vector<8x128xf32>
    %c56_27 = arith.constant 56 : index
    %c0_28 = arith.constant 0 : index
    %76 = vector.load %arg2[%c56_27, %c0_28] : memref<72x128xf32, #tpu.memory_space<vmem>>, vector<8x128xf32>
    tpu.vector_store %arg2[%c56_27, %c0_28], %75 {strides = array<i32>} : memref<72x128xf32, #tpu.memory_space<vmem>>, vector<8x128xf32>,
    %77 = arith.mulf %33, %60 : vector<8x128xf32>
    %c64_29 = arith.constant 64 : index
    %c0_30 = arith.constant 0 : index
    %78 = vector.load %arg2[%c64_29, %c0_30] : memref<72x128xf32, #tpu.memory_space<vmem>>, vector<8x128xf32>
    tpu.vector_store %arg2[%c64_29, %c0_30], %77 {strides = array<i32>} : memref<72x128xf32, #tpu.memory_space<vmem>>, vector<8x128xf32>,
    return
  }
  func.func @transform_0(%arg0: i32) -> (i32, i32) {
    %c0_i32 = arith.constant 0 : i32
    %c0_i32_0 = arith.constant 0 : i32
    return %c0_i32, %arg0 : i32, i32
  }
  func.func @transform_1(%arg0: i32) -> (i32, i32) {
    %c0_i32 = arith.constant 0 : i32
    %c0_i32_0 = arith.constant 0 : i32
    return %c0_i32, %arg0 : i32, i32
  }
}

</mosaic_0001>

<bundles_post_ra>
// kernel: axis_layer_forward.1
= control target key start
LH: loop header
LB: loop body
LE: loop exit
PB: predicated region body
PF: predicated region fallthrough
CT: control target
= control target key end

     0   :  { %s172_s0 = inlined_call_operand.vmem [shape: f32[104,128], index: 0, kind: input, shape index: {}]   ;;  %s173_s1 = inlined_call_operand.vmem [shape: f32[72,128], index: 1, kind: output, shape index: {}]  }
   0x1   :  { %v8_v0 = vld [vmem:[%s172_s0] sm:$0xff]  ;;  %v9_v1 = vld [vmem:[%s172_s0 + $0x8] sm:$0xff]  ;;  %v10_v2 = vld [vmem:[%s172_s0 + $0x10] sm:$0xff] }
   0x2   :  { %v11_v3 = vld [vmem:[%s172_s0 + $0x18] sm:$0xff]  ;;  %v13_v4 = vld [vmem:[%s172_s0 + $0x30] sm:$0xff]  ;;  %v16_v5 = vld [vmem:[%s172_s0 + $0x48] sm:$0xff] }
   0x3   :  { %v12_v6 = vmul.f32 %v11_v3, %v8_v0  ;;  %v14_v7 = vmul.f32 %v13_v4, %v9_v1  ;;  %v17_v8 = vmul.f32 %v16_v5, %v10_v2  ;;  %v19_v9 = vld [vmem:[%s172_s0 + $0x20] sm:$0xff]  ;;  %v21_v10 = vld [vmem:[%s172_s0 + $0x38] sm:$0xff]  ;;  %v24_v11 = vld [vmem:[%s172_s0 + $0x50] sm:$0xff] }
   0x4   :  { %v20_v12 = vmul.f32 %v19_v9, %v8_v0  ;;  %v22_v13 = vmul.f32 %v21_v10, %v9_v1  ;;  %v25_v14 = vmul.f32 %v24_v11, %v10_v2  ;;  %v27_v15 = vld [vmem:[%s172_s0 + $0x28] sm:$0xff]  ;;  %v29_v16 = vld [vmem:[%s172_s0 + $0x40] sm:$0xff]  ;;  %v32_v17 = vld [vmem:[%s172_s0 + $0x58] sm:$0xff] }
   0x5   :  { %v15_v18 = vadd.f32 %v14_v7, %v12_v6  ;;  %v28_v19 = vmul.f32 %v27_v15, %v8_v0  ;;  %v30_v20 = vmul.f32 %v29_v16, %v9_v1  ;;  %v33_v21 = vmul.f32 %v32_v17, %v10_v2  ;;  %v35_v25 = vld [vmem:[%s172_s0 + $0x60] sm:$0xff] }
   0x6   :  { %v23_v22 = vadd.f32 %v22_v13, %v20_v12 }
   0x7   :  { %v18_v23 = vadd.f32 %v17_v8, %v15_v18  ;;  %v31_v24 = vadd.f32 %v30_v20, %v28_v19 }
   0x8   :  { %v26_v26 = vadd.f32 %v25_v14, %v23_v22 }
   0x9   :  { %v34_v27 = vadd.f32 %v33_v21, %v31_v24  ;;  %v50_v28 = vmul.f32 %v18_v23, %v18_v23 }
   0xa   :  { %v51_v29 = vmul.f32 %v26_v26, %v26_v26  ;;  %v36_v30 = vmul.f32 %v35_v25, %v26_v26 }
   0xb   :  { %v53_v31 = vmul.f32 %v34_v27, %v34_v27  ;;  %v38_v32 = vsub.f32 %v34_v27, %v18_v23 }
   0xc   :  { %v52_v33 = vadd.f32 %v51_v29, %v50_v28  ;;  %v37_v34 = vsub.f32 %v36_v30, %v34_v27  ;;  %v40_v35 = vsub.f32 %v18_v23, %v36_v30 }
   0xd   :  { %v39_v36 = vmul.f32 %v38_v32, %v35_v25 }
   0xe   :  { %v54_v37 = vadd.f32 %v53_v31, %v52_v33  ;;  %v42_v38 = vmul.f32 %v40_v35, %v26_v26  ;;  %v44_v39 = vmul.f32 %v40_v35, %v18_v23  ;;  %v45_v40 = vmul.f32 %v37_v34, %v34_v27 }
   0xf   :  { %v41_v41 = vmul.f32 %v39_v36, %v34_v27  ;;  %v47_v42 = vmul.f32 %v37_v34, %v26_v26  ;;  %v48_v43 = vmul.f32 %v39_v36, %v18_v23  ;;  %v62_v44 = vmul.f32 %v37_v34, %v37_v34 }
  0x10   :  { %90 = vrsqrt.f32 %v54_v37  ;;  %v46_v45 = vsub.f32 %v44_v39, %v45_v40  ;;  %v63_v46 = vmul.f32 %v39_v36, %v39_v36  ;;  %v65_v47 = vmul.f32 %v40_v35, %v40_v35 }
  0x11   :  { %v43_v48 = vsub.f32 %v41_v41, %v42_v38  ;;  %v49_v49 = vsub.f32 %v47_v42, %v48_v43 }
  0x12   :  { %v57_v50 = vmul.f32 %v46_v45, %v46_v45  ;;  %v64_v51 = vadd.f32 %v63_v46, %v62_v44 }
  0x13   :  { %v56_v52 = vmul.f32 %v43_v48, %v43_v48  ;;  %v59_v53 = vmul.f32 %v49_v49, %v49_v49 }
  0x14   :  { %v66_v54 = vadd.f32 %v65_v47, %v64_v51 }
  0x15   :  { %v58_v55 = vadd.f32 %v57_v50, %v56_v52 }
  0x16   :  { %92 = vrsqrt.f32 %v66_v54 }
  0x17   :  { %v60_v56 = vadd.f32 %v59_v53, %v58_v55 }
  0x19   :  { %94 = vrsqrt.f32 %v60_v56 }
  0x1a   :  { %v91_v57 = vpop.eup %90 }
  0x1b   :  { %v68_v58 = vmul.f32 %v91_v57, %v18_v23  ;;  %v70_v59 = vmul.f32 %v91_v57, %v26_v26  ;;  %v72_v60 = vmul.f32 %v91_v57, %v34_v27 }
  0x1d   :  { %69 = vst [vmem:[%s173_s1] sm:$0xff] %v68_v58  ;;  %71 = vst [vmem:[%s173_s1 + $0x8] sm:$0xff] %v70_v59 }
  0x1e   :  { %73 = vst [vmem:[%s173_s1 + $0x10] sm:$0xff] %v72_v60 }
  0x20   :  { %v93_v61 = vpop.eup %92 }
  0x21   :  { %v80_v62 = vmul.f32 %v93_v61, %v37_v34  ;;  %v82_v63 = vmul.f32 %v93_v61, %v39_v36  ;;  %v84_v0 = vmul.f32 %v93_v61, %v40_v35 }
  0x23   :  { %v95_v1 = vpop.eup %94  ;;  %81 = vst [vmem:[%s173_s1 + $0x30] sm:$0xff] %v80_v62  ;;  %83 = vst [vmem:[%s173_s1 + $0x38] sm:$0xff] %v82_v63 }
  0x24   :  { %85 = vst [vmem:[%s173_s1 + $0x40] sm:$0xff] %v84_v0  ;;  %v74_v2 = vmul.f32 %v95_v1, %v43_v48  ;;  %v76_v3 = vmul.f32 %v95_v1, %v46_v45  ;;  %v78_v4 = vmul.f32 %v95_v1, %v49_v49 }
  0x26   :  { %75 = vst [vmem:[%s173_s1 + $0x18] sm:$0xff] %v74_v2  ;;  %77 = vst [vmem:[%s173_s1 + $0x20] sm:$0xff] %v76_v3 }
  0x27   :  { %79 = vst [vmem:[%s173_s1 + $0x28] sm:$0xff] %v78_v4 }

</bundles_post_ra>
